<compile_context>
chip_gen: v6e
topology: v6e:2x2x1
jax: 0.10.0
libtpu: 0.0.40
codegen_flags: <defaults>
</compile_context>

<pallas_src>
import functools

import jax
import jax.numpy as jnp
from jax import lax
from jax.experimental import pallas as pl
from jax.experimental.pallas import tpu as pltpu


_UNROLL_MAX_LAYERS = 8


def _round_up(x, m):
    return ((x + m - 1) // m) * m


def _cdiv(a, b):
    return (a + b - 1) // b


# --------------------------------------------------------------------------- kernel
def _mlp_logsoftmax_kernel(x_ref, w_ref, b_ref, wo_ref, bo_ref, out_ref,
                           *, num_layers, matmul_dtype):
    """One batch-tile of the full forward pass (all operands lane-padded to 128).

    x_ref  : (TB, Hp)        VMEM, matmul_dtype (bf16 by default)
    w_ref  : (Lp, Hp, Hp)    VMEM, matmul_dtype (stacked hidden weights, (in, out))
    b_ref  : (Lp, 1,  Hp)    VMEM, f32
    wo_ref : (Hp, Op)        VMEM, matmul_dtype
    bo_ref : (1,  Op)        VMEM, f32 (pad columns pre-set to -1e30 -> softmax mask)
    out_ref: (TB, Op)        VMEM, f32 (lane-dense; wrapper slices the real O columns)
    """
    h = x_ref[...]  # matmul_dtype

    # Hidden stack: Linear(H, H) + ReLU, `num_layers` times.
    # (Dropout p=0 / eval -> identity; BatchNorm disabled.)
    # Padded lanes stay exactly zero: padded weight rows/cols and biases are zero and
    # ReLU(0) = 0, so padding never perturbs the real lanes.
    def layer(i, h):
        a = jnp.dot(h, w_ref[i], preferred_element_type=jnp.float32) + b_ref[i]
        return jnp.maximum(a, 0.0).astype(matmul_dtype)

    if num_layers > 0:
        if num_layers <= _UNROLL_MAX_LAYERS:
            for i in range(num_layers):
                h = layer(i, h)
        else:
            h = lax.fori_loop(0, num_layers, layer, h)

    # Final projection to (lane-padded) logits.  Padded output columns get exactly 0
    # from the matmul and -1e30 from the bias, so they vanish from the softmax.
    logits = jnp.dot(h, wo_ref[...], preferred_element_type=jnp.float32) + bo_ref[...]

    # Numerically stable LogSoftmax along the last axis.
    m = jnp.max(logits, axis=-1, keepdims=True)
    shifted = logits - m
    lse = jnp.log(jnp.sum(jnp.exp(shifted), axis=-1, keepdims=True))
    out_ref[...] = (shifted - lse).astype(out_ref.dtype)


# --------------------------------------------------------------------------- wrapper
def prepare_params(hidden_w, hidden_b, out_w, out_b, *, matmul_dtype=jnp.bfloat16):
    """Pad + cast parameters once, at model-load time (NOT per forward call).

    hidden_w : (L, H, H) in (in, out) layout
    hidden_b : (L, H)
    out_w    : (H, O)    in (in, out) layout
    out_b    : (O,) or (1, O)
    Returns (hw_pad, hb_pad, wo_pad, bo_pad) lane-padded to multiples of 128.
    """
    L = int(hidden_w.shape[0])
    H = int(out_w.shape[0])
    O = int(out_w.shape[1])
    H_pad = _round_up(max(H, 1), 128)
    O_pad = _round_up(max(O, 1), 128)
    L_eff = max(L, 1)  # dummy never-read layer keeps BlockSpecs non-degenerate

    hw_pad = jnp.zeros((L_eff, H_pad, H_pad), matmul_dtype)
    hb_pad = jnp.zeros((L_eff, 1, H_pad), jnp.float32)
    if L > 0:
        hw_pad = hw_pad.at[:L, :H, :H].set(hidden_w.astype(matmul_dtype))
        hb_pad = hb_pad.at[:L, 0, :H].set(hidden_b.astype(jnp.float32))
    wo_pad = jnp.zeros((H_pad, O_pad), matmul_dtype).at[:H, :O].set(
        out_w.astype(matmul_dtype))

    # Bake the pad-column mask into the bias (large finite negative, no inf/NaN risk).
    if O_pad > O:
        bo_pad = jnp.full((1, O_pad), -1e30, jnp.float32)
    else:
        bo_pad = jnp.zeros((1, O_pad), jnp.float32)
    bo_pad = bo_pad.at[:, :O].set(out_b.astype(jnp.float32).reshape(1, O))
    return hw_pad, hb_pad, wo_pad, bo_pad


def _choose_batch_tiling(batch, batch_tile=None, *, max_tile=512, min_blocks=2):
    """Even batch tiling: >= 2 blocks when possible (v7x megacore), no huge tail pad."""
    B_pad = _round_up(batch, 8)
    if batch_tile is None:
        n_blocks = _cdiv(B_pad, max_tile)
        if B_pad >= 16:  # can split into >= 2 non-empty 8-row tiles
            n_blocks = max(n_blocks, min_blocks)
        batch_tile = _round_up(_cdiv(B_pad, n_blocks), 8)
    else:
        batch_tile = _round_up(batch_tile, 8)
    n_blocks = _cdiv(B_pad, batch_tile)
    return n_blocks * batch_tile, batch_tile, n_blocks


def _param_block_spec(shape, index_map):
    # Constant index_map -> the block never changes; single-buffer it so the resident
    # parameter footprint is 1x, not 2x.  Fall back gracefully if unsupported.
    try:
        return pl.BlockSpec(shape, index_map, pipeline_mode=pl.Buffered(1))
    except Exception:
        return pl.BlockSpec(shape, index_map)


def _pick_vmem_limit(needed_bytes):
    try:
        cap = pltpu.get_tpu_info().vmem_capacity_bytes
    except Exception:
        cap = 64 << 20  # v7x has the smallest physical VMEM per TensorCore
    budget = (cap * 3) // 4
    return int(min(max(needed_bytes, 32 << 20), budget))


def sentiment_classifier_forward(x, hw_pad, hb_pad, wo_pad, bo_pad, *,
                                 num_layers, output_size, batch_tile=None):
    """Fused MLP + LogSoftmax forward pass on TPU via Pallas.

    x : (B, H) float32.  Weights must come from prepare_params() (pre-padded / cast).
    Returns (B, output_size) float32 log-probabilities.
    """
    B, H = x.shape
    L_eff, H_pad, _ = hw_pad.shape
    O_pad = wo_pad.shape[1]
    matmul_dtype = hw_pad.dtype
    f32 = jnp.float32

    B_pad, batch_tile, n_blocks = _choose_batch_tiling(B, batch_tile)

    # Only x is padded per call (weights were pre-padded once in prepare_params).
    x_pad = jnp.pad(x.astype(matmul_dtype), ((0, B_pad - B), (0, H_pad - H)))

    kernel = functools.partial(_mlp_logsoftmax_kernel,
                               num_layers=num_layers, matmul_dtype=matmul_dtype)

    # VMEM budget estimate: params (x2 to be conservative about buffering), pipelined
    # x / output tiles, plus headroom for in-kernel intermediates.
    msize = jnp.dtype(matmul_dtype).itemsize
    param_bytes = (hw_pad.size * msize + hb_pad.size * 4
                   + wo_pad.size * msize + bo_pad.size * 4)
    io_bytes = 2 * batch_tile * H_pad * msize + 2 * batch_tile * O_pad * 4
    scratch_bytes = 4 * batch_tile * max(H_pad, O_pad) * 4
    vmem_limit = _pick_vmem_limit(2 * param_bytes + io_bytes + scratch_bytes)

    flops = 2 * B_pad * H_pad * (num_layers * H_pad + O_pad)
    bytes_accessed = x_pad.size * msize + param_bytes + B_pad * O_pad * 4

    out_pad = pl.pallas_call(
        kernel,
        out_shape=jax.ShapeDtypeStruct((B_pad, O_pad), f32),
        grid_spec=pl.GridSpec(
            grid=(n_blocks,),
            in_specs=[
                # batch tile of the activations (pipelined / double-buffered)
                pl.BlockSpec((batch_tile, H_pad), lambda i: (i, 0)),
                # parameter tensors: resident across the grid, single-buffered
                _param_block_spec((L_eff, H_pad, H_pad), lambda i: (0, 0, 0)),
                _param_block_spec((L_eff, 1, H_pad), lambda i: (0, 0, 0)),
                _param_block_spec((H_pad, O_pad), lambda i: (0, 0)),
                _param_block_spec((1, O_pad), lambda i: (0, 0)),
            ],
            # lane-dense output block (O padded to 128) -> unmasked vst
            out_specs=pl.BlockSpec((batch_tile, O_pad), lambda i: (i, 0)),
        ),
        compiler_params=pltpu.CompilerParams(
            dimension_semantics=("parallel",),
            vmem_limit_bytes=vmem_limit,
        ),
        cost_estimate=pl.CostEstimate(
            flops=flops,
            transcendentals=B_pad * (O_pad + 1),
            bytes_accessed=bytes_accessed,
        ),
    )(x_pad, hw_pad, hb_pad, wo_pad, bo_pad)

    return out_pad[:B, :output_size]


# --------------------------------------------------------------------------- helpers
def init_params(key, num_layers, hidden_size, output_size):
    """Deterministic parameter init (PyTorch-Linear-like uniform fan-in)."""
    keys = jax.random.split(key, 2 * num_layers + 2)
    bound_h = 1.0 / jnp.sqrt(hidden_size)

    hw, hb = [], []
    for i in range(num_layers):
        # stored as (in, out) so the kernel does h @ W + b
        hw.append(jax.random.uniform(keys[2 * i], (hidden_size, hidden_size),
                                     jnp.float32, -bound_h, bound_h))
        hb.append(jax.random.uniform(keys[2 * i + 1], (hidden_size,),
                                     jnp.float32, -bound_h, bound_h))
    hidden_w = (jnp.stack(hw, axis=0) if num_layers > 0
                else jnp.zeros((0, hidden_size, hidden_size), jnp.float32))
    hidden_b = (jnp.stack(hb, axis=0) if num_layers > 0
                else jnp.zeros((0, hidden_size), jnp.float32))

    out_w = jax.random.uniform(keys[-2], (hidden_size, output_size),
                               jnp.float32, -bound_h, bound_h)
    out_b = jax.random.uniform(keys[-1], (1, output_size),
                               jnp.float32, -bound_h, bound_h)
    return hidden_w, hidden_b, out_w, out_b


def reference_forward(x, hidden_w, hidden_b, out_w, out_b, matmul_dtype=jnp.float32):
    """Pure-JAX reference (matmul precision selectable to match the kernel)."""
    h = x.astype(matmul_dtype)
    for i in range(hidden_w.shape[0]):
        a = jnp.dot(h, hidden_w[i].astype(matmul_dtype),
                    preferred_element_type=jnp.float32) + hidden_b[i]
        h = jnp.maximum(a, 0.0).astype(matmul_dtype)
    logits = jnp.dot(h, out_w.astype(matmul_dtype),
                     preferred_element_type=jnp.float32) + out_b
    return jax.nn.log_softmax(logits, axis=-1)


# --------------------------------------------------------------------------- demo
if __name__ == "__main__":
    # SentimentClassifier(num_layers=2, hidden_size=32, output_size=2,
    #                     dropout=0.0, batch_norm=False)
    NUM_LAYERS = 2
    HIDDEN = 32
    OUTPUT = 2
    BATCH = 16

    key = jax.random.PRNGKey(0)
    k_x, k_p = jax.random.split(key)
    x = jax.random.normal(k_x, (BATCH, HIDDEN), dtype=jnp.float32)
    hidden_w, hidden_b, out_w, out_b = init_params(k_p, NUM_LAYERS, HIDDEN, OUTPUT)

    # --- bf16 matmul path (production default) -------------------------------
    params_bf16 = prepare_params(hidden_w, hidden_b, out_w, out_b,
                                 matmul_dtype=jnp.bfloat16)
    fwd_bf16 = jax.jit(functools.partial(sentiment_classifier_forward,
                                         num_layers=NUM_LAYERS, output_size=OUTPUT))
    out = jax.block_until_ready(fwd_bf16(x, *params_bf16))
    assert out.shape == (BATCH, OUTPUT)

    ref_bf16 = reference_forward(x, hidden_w, hidden_b, out_w, out_b,
                                 matmul_dtype=jnp.bfloat16)
    ref_f32 = reference_forward(x, hidden_w, hidden_b, out_w, out_b)
    assert jnp.allclose(out, ref_bf16, atol=2e-3, rtol=2e-3), "mismatch vs bf16 reference"
    assert jnp.allclose(out, ref_f32, atol=1e-1), "too far from f32 reference"
    # log-softmax rows must exponentiate-sum to 1
    assert jnp.allclose(jnp.sum(jnp.exp(out), axis=-1), 1.0, atol=1e-4)

    # --- f32 matmul path (exactness anchor vs f32 reference) -----------------
    params_f32 = prepare_params(hidden_w, hidden_b, out_w, out_b,
                                matmul_dtype=jnp.float32)
    out_f32 = jax.block_until_ready(
        sentiment_classifier_forward(x, *params_f32,
                                     num_layers=NUM_LAYERS, output_size=OUTPUT))
    assert jnp.allclose(out_f32, ref_f32, atol=1e-5, rtol=1e-5), "mismatch (f32 path)"

    # --- num_layers == 0 edge case (just final Linear + LogSoftmax) ----------
    hw0, hb0, ow0, ob0 = init_params(k_p, 0, HIDDEN, OUTPUT)
    params0 = prepare_params(hw0, hb0, ow0, ob0, matmul_dtype=jnp.bfloat16)
    out0 = jax.block_until_ready(
        sentiment_classifier_forward(x, *params0, num_layers=0, output_size=OUTPUT))
    ref0 = reference_forward(x, hw0, hb0, ow0, ob0, matmul_dtype=jnp.bfloat16)
    assert jnp.allclose(out0, ref0, atol=2e-3, rtol=2e-3), "mismatch (L=0)"

    print("KERNEL_OK")
</pallas_src>

<mosaic_0001>
module attributes {stable_mosaic.version = 11 : i64} {
  func.func @_mlp_logsoftmax_kernel(%arg0: i32, %arg1: memref<8x128xbf16, #tpu.memory_space<vmem>>, %arg2: memref<2x128x128xbf16, #tpu.memory_space<vmem>>, %arg3: memref<2x1x128xf32, #tpu.memory_space<vmem>>, %arg4: memref<128x128xbf16, #tpu.memory_space<vmem>>, %arg5: memref<1x128xf32, #tpu.memory_space<vmem>>, %arg6: memref<8x128xf32, #tpu.memory_space<vmem>>) attributes {dimension_semantics = [#tpu.dimension_semantics<parallel>], iteration_bounds = array<i64: 2>, scalar_prefetch = 0 : i64, scratch_operands = 0 : i64, tpu.core_type = #tpu.core_type<tc>, window_params = [{transform_indices = @transform_0, window_bounds = array<i64: 8, 128>}, {pipeline_mode = #tpu.pipeline_mode<synchronous>, transform_indices = @transform_1, window_bounds = array<i64: 2, 128, 128>}, {pipeline_mode = #tpu.pipeline_mode<synchronous>, transform_indices = @transform_2, window_bounds = array<i64: 2, 1, 128>}, {pipeline_mode = #tpu.pipeline_mode<synchronous>, transform_indices = @transform_3, window_bounds = array<i64: 128, 128>}, {pipeline_mode = #tpu.pipeline_mode<synchronous>, transform_indices = @transform_4, window_bounds = array<i64: 1, 128>}, {transform_indices = @transform_5, window_bounds = array<i64: 8, 128>}]} {
    %c0 = arith.constant 0 : index
    %c0_0 = arith.constant 0 : index
    %0 = vector.load %arg1[%c0, %c0_0] : memref<8x128xbf16, #tpu.memory_space<vmem>>, vector<8x128xbf16>
    %c0_1 = arith.constant 0 : index
    %c0_2 = arith.constant 0 : index
    %c0_3 = arith.constant 0 : index
    %1 = vector.load %arg2[%c0_1, %c0_2, %c0_3] : memref<2x128x128xbf16, #tpu.memory_space<vmem>>, vector<1x128x128xbf16>
    %2 = vector.shape_cast %1 : vector<1x128x128xbf16> to vector<128x128xbf16>
    %cst = arith.constant dense<0.000000e+00> : vector<8x128xf32>
    %3 = tpu.matmul %0, %2, %cst {dimension_numbers = #tpu.dot_dimension_numbers<[1], [0], [0], [1], [0, 0, 1, 1], [], []>} : vector<8x128xbf16>, vector<128x128xbf16>, vector<8x128xf32> -> vector<8x128xf32>
    %c0_4 = arith.constant 0 : index
    %c0_5 = arith.constant 0 : index
    %c0_6 = arith.constant 0 : index
    %4 = vector.load %arg3[%c0_4, %c0_5, %c0_6] : memref<2x1x128xf32, #tpu.memory_space<vmem>>, vector<1x1x128xf32>
    %5 = vector.shape_cast %4 : vector<1x1x128xf32> to vector<1x128xf32>
    %6 = vector.broadcast %5 : vector<1x128xf32> to vector<8x128xf32>
    %7 = arith.addf %3, %6 : vector<8x128xf32>
    %cst_7 = arith.constant 0.000000e+00 : f32
    %8 = vector.broadcast %cst_7 : f32 to vector<8x128xf32>
    %9 = arith.maximumf %7, %8 : vector<8x128xf32>
    %10 = arith.truncf %9 : vector<8x128xf32> to vector<8x128xbf16>
    %c1 = arith.constant 1 : index
    %c0_8 = arith.constant 0 : index
    %c0_9 = arith.constant 0 : index
    %11 = vector.load %arg2[%c1, %c0_8, %c0_9] : memref<2x128x128xbf16, #tpu.memory_space<vmem>>, vector<1x128x128xbf16>
    %12 = vector.shape_cast %11 : vector<1x128x128xbf16> to vector<128x128xbf16>
    %cst_10 = arith.constant dense<0.000000e+00> : vector<8x128xf32>
    %13 = tpu.matmul %10, %12, %cst_10 {dimension_numbers = #tpu.dot_dimension_numbers<[1], [0], [0], [1], [0, 0, 1, 1], [], []>} : vector<8x128xbf16>, vector<128x128xbf16>, vector<8x128xf32> -> vector<8x128xf32>
    %c1_11 = arith.constant 1 : index
    %c0_12 = arith.constant 0 : index
    %c0_13 = arith.constant 0 : index
    %14 = vector.load %arg3[%c1_11, %c0_12, %c0_13] : memref<2x1x128xf32, #tpu.memory_space<vmem>>, vector<1x1x128xf32>
    %15 = vector.shape_cast %14 : vector<1x1x128xf32> to vector<1x128xf32>
    %16 = vector.broadcast %15 : vector<1x128xf32> to vector<8x128xf32>
    %17 = arith.addf %13, %16 : vector<8x128xf32>
    %cst_14 = arith.constant 0.000000e+00 : f32
    %18 = vector.broadcast %cst_14 : f32 to vector<8x128xf32>
    %19 = arith.maximumf %17, %18 : vector<8x128xf32>
    %20 = arith.truncf %19 : vector<8x128xf32> to vector<8x128xbf16>
    %c0_15 = arith.constant 0 : index
    %c0_16 = arith.constant 0 : index
    %21 = vector.load %arg4[%c0_15, %c0_16] : memref<128x128xbf16, #tpu.memory_space<vmem>>, vector<128x128xbf16>
    %cst_17 = arith.constant dense<0.000000e+00> : vector<8x128xf32>
    %22 = tpu.matmul %20, %21, %cst_17 {dimension_numbers = #tpu.dot_dimension_numbers<[1], [0], [0], [1], [0, 0, 1, 1], [], []>} : vector<8x128xbf16>, vector<128x128xbf16>, vector<8x128xf32> -> vector<8x128xf32>
    %c0_18 = arith.constant 0 : index
    %c0_19 = arith.constant 0 : index
    %23 = vector.load %arg5[%c0_18, %c0_19] : memref<1x128xf32, #tpu.memory_space<vmem>>, vector<1x128xf32>
    %24 = vector.broadcast %23 : vector<1x128xf32> to vector<8x128xf32>
    %25 = arith.addf %22, %24 : vector<8x128xf32>
    %cst_20 = arith.constant dense<0xFF800000> : vector<8xf32>
    %26 = vector.multi_reduction <maximumf>, %25, %cst_20 [1] : vector<8x128xf32> to vector<8xf32>
    %27 = vector.shape_cast %26 : vector<8xf32> to vector<8x1xf32>
    %28 = vector.broadcast %27 : vector<8x1xf32> to vector<8x128xf32>
    %29 = arith.subf %25, %28 : vector<8x128xf32>
    %30 = math.exp %29 : vector<8x128xf32>
    %cst_21 = arith.constant dense<0.000000e+00> : vector<8xf32>
    %31 = vector.multi_reduction <add>, %30, %cst_21 [1] : vector<8x128xf32> to vector<8xf32>
    %32 = vector.shape_cast %31 : vector<8xf32> to vector<8x1xf32>
    %33 = math.log %32 : vector<8x1xf32>
    %34 = vector.broadcast %33 : vector<8x1xf32> to vector<8x128xf32>
    %35 = arith.subf %29, %34 : vector<8x128xf32>
    %c0_22 = arith.constant 0 : index
    %c0_23 = arith.constant 0 : index
    %36 = vector.load %arg6[%c0_22, %c0_23] : memref<8x128xf32, #tpu.memory_space<vmem>>, vector<8x128xf32>
    tpu.vector_store %arg6[%c0_22, %c0_23], %35 {strides = array<i32>} : memref<8x128xf32, #tpu.memory_space<vmem>>, vector<8x128xf32>,
    return
  }
  func.func @transform_0(%arg0: i32) -> (i32, i32) {
    %c0_i32 = arith.constant 0 : i32
    %c0_i32_0 = arith.constant 0 : i32
    return %arg0, %c0_i32 : i32, i32
  }
  func.func @transform_1(%arg0: i32) -> (i32, i32, i32) {
    %c0_i32 = arith.constant 0 : i32
    %c0_i32_0 = arith.constant 0 : i32
    %c0_i32_1 = arith.constant 0 : i32
    %c0_i32_2 = arith.constant 0 : i32
    return %c0_i32, %c0_i32_0, %c0_i32_1 : i32, i32, i32
  }
  func.func @transform_2(%arg0: i32) -> (i32, i32, i32) {
    %c0_i32 = arith.constant 0 : i32
    %c0_i32_0 = arith.constant 0 : i32
    %c0_i32_1 = arith.constant 0 : i32
    %c0_i32_2 = arith.constant 0 : i32
    return %c0_i32, %c0_i32_0, %c0_i32_1 : i32, i32, i32
  }
  func.func @transform_3(%arg0: i32) -> (i32, i32) {
    %c0_i32 = arith.constant 0 : i32
    %c0_i32_0 = arith.constant 0 : i32
    %c0_i32_1 = arith.constant 0 : i32
    return %c0_i32, %c0_i32_0 : i32, i32
  }
  func.func @transform_4(%arg0: i32) -> (i32, i32) {
    %c0_i32 = arith.constant 0 : i32
    %c0_i32_0 = arith.constant 0 : i32
    %c0_i32_1 = arith.constant 0 : i32
    return %c0_i32, %c0_i32_0 : i32, i32
  }
  func.func @transform_5(%arg0: i32) -> (i32, i32) {
    %c0_i32 = arith.constant 0 : i32
    %c0_i32_0 = arith.constant 0 : i32
    return %arg0, %c0_i32 : i32, i32
  }
}

</mosaic_0001>

<bundles_post_ra>
// kernel: sentiment_classifier_forward.1
= control target key start
LH: loop header
LB: loop body
LE: loop exit
PB: predicated region body
PF: predicated region fallthrough
CT: control target
= control target key end

     0   :  { %10 = vsyncpa [#allocation3], 0  ;;  %s1075_s0 = inlined_call_operand.vmem [shape: bf16[16,128], index: 0, kind: input, shape index: {}]   ;;  %s1076_s1 = inlined_call_operand.hbm [shape: bf16[2,128,128], index: 1, kind: input, shape index: {}]   ;;  %s1077_s2 = inlined_call_operand.vmem [shape: f32[2,1,128], index: 2, kind: input, shape index: {}]   ;;  %s1078_s3 = inlined_call_operand.hbm [shape: bf16[128,128], index: 3, kind: input, shape index: {}]   ;;  %s1079_s4 = inlined_call_operand.vmem [shape: f32[1,128], index: 4, kind: input, shape index: {}]   ;;  %s1080_s5 = inlined_call_operand.vmem [shape: f32[16,128], index: 5, kind: output, shape index: {}]  }
   0x1   :  { %11 = vsyncpa [#allocation5], 0  ;;  %s970_s18 = smov 0  }
   0x2 LB: > { %s976_s19 = sadd.s32 4294967295, %s932_s18   ;;  %p679_p0 = scmp.ge.s32.totalorder %s932_s18, 1  ;;  %s932_s18 = sphi %s970_s18, %s17_s18  }
   0x3   : > { %p158_p1 = scmp.lt.s32.totalorder %s932_s18, 3  ;;  %s934_s20 = smov [#allocation2]  }
   0x4   : > { %s170_s21 = sshll.u32 %s934_s20, 4  ;;  %p820_p3 = scmp.eq.s32.totalorder %s976_s19, 0  ;;  %s171_s21 = int_to_ptr.vmem [resolvable:$true] %s170_s21 }
   0x5   : > { %p980_p2 = pnand %p679_p0, %p158_p1  ;;  %s935_s23 = smov [#allocation4]  }
   0x6   : > { %s186_s24 = sshll.u32 %s935_s23, 4  ;;  %s877_s26 = scalar_lea.vmem %s171_s21, 2048  ;;  %s187_s24 = int_to_ptr.vmem [resolvable:$true] %s186_s24 }
   0x7   : > { %p813_p4 = pneg %p980_p2  ;;  %p878_p7 = scmp.ne.s32.totalorder %s171_s21, %s877_s26 }
   0x8   : > { %p885_p10 = scmp.lt.s32.totalorder %s171_s21, %s171_s21  ;;  %p886_p11 = scmp.lt.s32.totalorder %s877_s26, %s877_s26 }
   0x9   : > { %p989_p5 = pnand %p820_p3, %p813_p4 }
   0xa   : > { %p887_p12 = por %p886_p11, %p885_p10 }
   0xb   : > { %p868_p6 = pneg %p989_p5 }
   0xd   : > { %p880_p8 = pnand %p878_p7, %p868_p6 }
   0xf   : > { %p881_p9 = pneg %p880_p8 }
  0x11   : > { %p888_p13 = pnand %p887_p12, %p881_p9 }
  0x13   : > { %891 = shalt.err (!%p888_p13)
}
  0x14   : > { %s936_s27 = smov 64   ;;  %s937_s28 = smov 4  }
  0x15   : > { %816 = dma.hbm_to_vmem [thread:$0]  (!%p989_p5), %s1076_s1, 2048, %s171_s21, [#allocation3], %s936_s27, %s936_s27, %s937_s28  }
  0x16   : > { %s903_s6 = scalar_lea.vmem %s187_s24, 1024  ;;  %p911_p7 = scmp.lt.s32.totalorder %s187_s24, %s187_s24 }
  0x17   : > { %p904_p0 = scmp.ne.s32.totalorder %s187_s24, %s903_s6  ;;  %p912_p8 = scmp.lt.s32.totalorder %s903_s6, %s903_s6 }
  0x19   : > { %p906_p1 = pnand %p904_p0, %p868_p6  ;;  %p913_p10 = por %p912_p8, %p911_p7 }
  0x1b   : > { %p907_p4 = pneg %p906_p1 }
  0x1d   : > { %p914_p9 = pnand %p913_p10, %p907_p4 }
  0x1f   : > { %917 = shalt.err (!%p914_p9)
}
  0x20   : > { %819 = dma.hbm_to_vmem [thread:$0]  (!%p989_p5), %s1078_s3, 1024, %s187_s24, [#allocation5], %s936_s27, %s936_s27, %s937_s28  }
  0x21   : > { %212 = sbr.rel (%p980_p2) target bundleno = 981 (0x3d5), region = 40 }
  0x26   : > { %923 = dma.done.wait (%p820_p3), [#allocation3], 2048  }
  0x27   : > { %925 = vsyncadd (%p820_p3), [#allocation3], 4294965248 }
  0x28   : > { %927 = dma.done.wait (%p820_p3), [#allocation5], 1024  }
  0x29   : > { %929 = vsyncadd (%p820_p3), [#allocation5], 4294966272  ;;  %v938_v0 = vmov 0.0   ;;  %vm939_vm0 = vmmov 0   ;;  %v838_v1 = vld [vmem:[#allocation2 + $0x38] sm:$0xff]   ;;  %v839_v2 = vld [vmem:[#allocation2 + $0x30] sm:$0xff]  }
  0x2a   : > { %745 = vmatprep.subr.bf16.mxu0 %v938_v0  ;;  %761 = vmatprep.mubr.msk.bf16.mxu0 %vm939_vm0, %v938_v0  ;;  %v840_v3 = vld [vmem:[#allocation2 + $0x28] sm:$0xff]   ;;  %v846_v4 = vld [vmem:[#allocation2 + $0x78] sm:$0xff]   ;;  %v841_v5 = vld [vmem:[#allocation2 + $0x20] sm:$0xff]   ;;  %p242_p2 = scmp.lt.s32.totalorder %s976_s19, 1 }
  0x2b   : > { %765 = vmatprep.subr.bf16.mxu1 %v938_v0  ;;  %781 = vmatprep.mubr.msk.bf16.mxu1 %vm939_vm0, %v938_v0  ;;  %v847_v6 = vld [vmem:[#allocation2 + $0x70] sm:$0xff]   ;;  %v842_v7 = vld [vmem:[#allocation2 + $0x18] sm:$0xff]   ;;  %v848_v8 = vld [vmem:[#allocation2 + $0x68] sm:$0xff]  }
  0x2c   : > { %746 = vmatpush3.bf16.msra.mxu0 %v838_v1  ;;  %766 = vmatpush3.bf16.msra.mxu1 %v846_v4  ;;  %s1084_s19 = smov (!%p242_p2, %s976_s19), 1  ;;  %v843_v9 = vld [vmem:[#allocation2 + $0x10] sm:$0xff]   ;;  %v849_v10 = vld [vmem:[#allocation2 + $0x60] sm:$0xff]   ;;  %v844_v11 = vld [vmem:[#allocation2 + $0x8] sm:$0xff]  }
  0x2d   : > { %747 = vmatprep.subr.bf16.mxu0 %v938_v0  ;;  %767 = vmatprep.subr.bf16.mxu1 %v938_v0  ;;  %v850_v12 = vld [vmem:[#allocation2 + $0x58] sm:$0xff]   ;;  %s686_s9 = sshll.u32 %s1084_s19, 2  ;;  %v845_v13 = vld [vmem:[#allocation2] sm:$0xff]   ;;  %v851_v14 = vld [vmem:[#allocation2 + $0x50] sm:$0xff]   ;;  %s687_s21 = sshll.u32 %s1084_s19, 3 }
  0x2e   : > { %s245_s12 = scalar_lea.vmem %s1075_s0, %s686_s9  ;;  %v852_v16 = vld [vmem:[#allocation2 + $0x48] sm:$0xff]   ;;  %v853_v17 = vld [vmem:[#allocation2 + $0x40] sm:$0xff]   ;;  %v854_v18 = vld [vmem:[#allocation4 + $0x38] sm:$0xff]   ;;  %s249_s24 = scalar_lea.vmem %s1080_s5, %s687_s21 }
  0x2f   : > { %v251_v15 = vld [vmem:[%s245_s12] sm:$0xf]  ;;  %v855_v19 = vld [vmem:[#allocation4 + $0x30] sm:$0xff]   ;;  %v856_v20 = vld [vmem:[#allocation4 + $0x28] sm:$0xff]  }
  0x30   : > { %748 = vmatpush3.bf16.msra.mxu0 %v839_v2  ;;  %768 = vmatpush3.bf16.msra.mxu1 %v847_v6  ;;  %v857_v21 = vld [vmem:[#allocation4 + $0x20] sm:$0xff]   ;;  %v858_v22 = vld [vmem:[#allocation4 + $0x18] sm:$0xff]   ;;  %v859_v23 = vld [vmem:[#allocation4 + $0x10] sm:$0xff]  }
  0x31   : > { %749 = vmatprep.subr.bf16.mxu0 %v938_v0  ;;  %769 = vmatprep.subr.bf16.mxu1 %v938_v0  ;;  %v688_v24 = vld [vmem:[%s1077_s2] ss:$0 sm:$0xff]  ;;  %v860_v32 = vld [vmem:[#allocation4 + $0x8] sm:$0xff]   ;;  %v698_v34 = vld [vmem:[%s1077_s2 + $0x1] ss:$0 sm:$0xff] }
  0x32   : > { %v861_v33 = vld [vmem:[#allocation4] sm:$0xff]  }
  0x33   : > { %v707_v42 = vld [vmem:[%s1079_s4] ss:$0 sm:$0xff] }
  0x34   : > { %750 = vmatpush3.bf16.msra.mxu0 %v840_v3  ;;  %770 = vmatpush3.bf16.msra.mxu1 %v848_v8 }
  0x35   : > { %751 = vmatprep.subr.bf16.mxu0 %v938_v0  ;;  %771 = vmatprep.subr.bf16.mxu1 %v938_v0 }
  0x38   : > { %752 = vmatpush3.bf16.msra.mxu0 %v841_v5  ;;  %772 = vmatpush3.bf16.msra.mxu1 %v849_v10 }
  0x39   : > { %753 = vmatprep.subr.bf16.mxu0 %v938_v0  ;;  %773 = vmatprep.subr.bf16.mxu1 %v938_v0 }
  0x3c   : > { %754 = vmatpush3.bf16.msra.mxu0 %v842_v7  ;;  %774 = vmatpush3.bf16.msra.mxu1 %v850_v12 }
  0x3d   : > { %755 = vmatprep.subr.bf16.mxu0 %v938_v0  ;;  %775 = vmatprep.subr.bf16.mxu1 %v938_v0 }
  0x40   : > { %756 = vmatpush3.bf16.msra.mxu0 %v843_v9  ;;  %776 = vmatpush3.bf16.msra.mxu1 %v851_v14 }
  0x41   : > { %757 = vmatprep.subr.bf16.mxu0 %v938_v0  ;;  %777 = vmatprep.subr.bf16.mxu1 %v938_v0 }
  0x44   : > { %758 = vmatpush3.bf16.msra.mxu0 %v844_v11  ;;  %778 = vmatpush3.bf16.msra.mxu1 %v852_v16 }
  0x45   : > { %759 = vmatprep.subr.bf16.mxu0 %v938_v0  ;;  %779 = vmatprep.subr.bf16.mxu1 %v938_v0 }
  0x48   : > { %760 = vmatpush3.bf16.msra.mxu0 %v845_v13  ;;  %780 = vmatpush3.bf16.msra.mxu1 %v853_v17 }
  0x49   : > { %785 = vmatprep.subr.bf16.mxu0 %v938_v0 }
  0x4b   : > { %762 = vmatmul.mubr.bf16.vlgmr.msra.gmra.mxu0 %v251_v15 }
  0x4c   : > { %801 = vmatprep.mubr.msk.bf16.mxu0 %vm939_vm0, %v938_v0  ;;  %786 = vmatpush3.bf16.msra.mxu0 %v854_v18 }
  0x4d   : > { %787 = vmatprep.subr.bf16.mxu0 %v938_v0 }
  0x50   : > { %788 = vmatpush3.bf16.msra.mxu0 %v855_v19 }
  0x51   : > { %789 = vmatprep.subr.bf16.mxu0 %v938_v0 }
  0x54   : > { %790 = vmatpush3.bf16.msra.mxu0 %v856_v20 }
  0x55   : > { %791 = vmatprep.subr.bf16.mxu0 %v938_v0 }
  0x58   : > { %792 = vmatpush3.bf16.msra.mxu0 %v857_v21 }
  0x59   : > { %793 = vmatprep.subr.bf16.mxu0 %v938_v0 }
  0x5c   : > { %794 = vmatpush3.bf16.msra.mxu0 %v858_v22 }
  0x5d   : > { %795 = vmatprep.subr.bf16.mxu0 %v938_v0 }
  0x60   : > { %796 = vmatpush3.bf16.msra.mxu0 %v859_v23 }
  0x61   : > { %797 = vmatprep.subr.bf16.mxu0 %v938_v0 }
  0x64   : > { %798 = vmatpush3.bf16.msra.mxu0 %v860_v32 }
  0x65   : > { %799 = vmatprep.subr.bf16.mxu0 %v938_v0 }
  0x68   : > { %800 = vmatpush3.bf16.msra.mxu0 %v861_v33 }
 0x10b   : > { %v357_v25 = vpop.f32.mrf.mxu0 }
 0x10c   : > { %v358_v26 = vadd.f32 %v688_v24, %v357_v25 }
 0x10d   : > { %v763_v27 = vpop.f32.mrf.mxu0 }
 0x10e   : > { %v363_v28 = vmax.f32 %v358_v26, 0.0 }
 0x10f   : > { %v360_v29 = vpop.f32.mrf.mxu0 }
 0x110   : > { %v364_v30 = vpack.c.bf16 %v363_v28, %v363_v28 }
 0x111   : > { %v764_v31 = vpop.f32.mrf.mxu0 }
 0x112   : > { %782 = vmatmul.mubr.bf16.vlgmr.msra.gmra.mxu1 %v364_v30 }
 0x1d2   : > { %v472_v35 = vpop.f32.mrf.mxu1 }
 0x1d3   : > { %v473_v36 = vadd.f32 %v698_v34, %v472_v35 }
 0x1d4   : > { %v783_v37 = vpop.f32.mrf.mxu1 }
 0x1d5   : > { %v478_v38 = vmax.f32 %v473_v36, 0.0 }
 0x1d6   : > { %v475_v39 = vpop.f32.mrf.mxu1 }
 0x1d7   : > { %v479_v40 = vpack.c.bf16 %v478_v38, %v478_v38 }
 0x1d8   : > { %v784_v41 = vpop.f32.mrf.mxu1 }
 0x1d9   : > { %802 = vmatmul.mubr.bf16.vlgmr.msra.gmra.mxu0 %v479_v40 }
 0x299   : > { %v585_v43 = vpop.f32.mrf.mxu0 }
 0x29a   : > { %v586_v44 = vadd.f32 %v707_v42, %v585_v43 }
 0x29b   : > { %v803_v45 = vpop.f32.mrf.mxu0 }
 0x29c   : > { %591 = vmax.xlane.f32.xlu0 %v586_v44 }
 0x29d   : > { %v588_v46 = vpop.f32.mrf.mxu0 }
 0x29f   : > { %v804_v47 = vpop.f32.mrf.mxu0 }
 0x325   : > { %v592_v48 = vpop.xlane.xlu0 %591 }
 0x326   : > { %v593_v49 = vsub.f32 %v586_v44, %v592_v48 }
 0x328   : > { %v594_v50 = vmul.f32 1.442695, %v593_v49 }
 0x32a   : > { %862 = vpow2.f32 %v594_v50 }
 0x337   : > { %v863_v51 = vpop.eup %862 }
 0x338   : > { %596 = vadd.xlane.f32.xlu0 %v863_v51 }
 0x3c1   : > { %v597_v52 = vpop.xlane.xlu0 %596 }
 0x3c2   : > { %864 = vlog2.f32 %v597_v52 }
 0x3cf   : > { %v865_v53 = vpop.eup %864 }
 0x3d0   : > { %v599_v54 = vmul.f32 0.6931472, %v865_v53 }
 0x3d2   : > { %v600_v55 = vsub.f32 %v593_v49, %v599_v54 }
 0x3d4   : > { %601 = vst [vmem:[%s249_s24] sm:$0xff] %v600_v55 }
 0x3d5 PF: > { %s17_s18 = sadd.s32 1, %s932_s18  }
 0x3d6   : > { %p14_p3 = scmp.ge.s32.totalorder %s17_s18, 4  }
 0x3d8   :  { %16 = sbr.rel (!%p14_p3) target bundleno = 2 (0x2), region = 81 }
 0x3dd   :  { %621 = vsyncpa [#allocation3], 1 }
 0x3de   :  { %623 = vsyncpa [#allocation3 + $0x1], 1 }
 0x3df   :  { %624 = vsyncpa [#allocation5], 1 }

</bundles_post_ra>
